<compile_context>
chip_gen: v7x
topology: tpu7x:2x2x1
jax: 0.10.0
libtpu: 0.0.40
codegen_flags: <defaults>
</compile_context>

<pallas_src>
import jax
import jax.numpy as jnp
from jax import lax
from jax.experimental import pallas as pl
from jax.experimental.pallas import tpu as pltpu


def doc_encoder_kernel(x2_ref, wih_ref, whh_ref, b_ref,
                       wctx_ref, bctx_ref, uw_ref,
                       ctx_ref, alphas_ref,
                       xproj_scr, rec_scr):
    T = x2_ref.shape[0]
    H2 = rec_scr.shape[1]          # 2H (fused fwd|bwd hidden width)
    H = H2 // 2
    G = 4 * H2                     # 8H gate lanes

    # ---- prologue: direction-blended gate inputs for all timesteps, one MXU matmul ----
    # x2 row t = [x_t | x_{T-1-t}]; wih rows 0:E feed forward-gate lanes, rows E:2E feed
    # backward-gate lanes, so xproj row t already holds the per-direction gate inputs.
    xproj_scr[...] = (jnp.dot(x2_ref[...], wih_ref[...],
                              preferred_element_type=jnp.float32)
                      + b_ref[...])

    whh = whh_ref[...]             # (2H, 8H) block-diagonal, loaded once

    h0 = jnp.zeros((1, H2), jnp.float32)
    c0 = jnp.zeros((1, H2), jnp.float32)

    # TODO(synk): on v7x, pin whh in the MXU weight registers for the whole recurrence
    # (pltpu.matmul_push_rhs once, then matmul_acc_lhs/matmul_pop per step) instead of
    # re-staging the RHS every step.
    def step(s, carry):
        h, c = carry               # (1, 2H) = [fwd | bwd]
        # Single blended input row (only load on the serial chain besides h/c).
        gates = xproj_scr[pl.ds(s, 1), :] + jnp.dot(h, whh,
                                                    preferred_element_type=jnp.float32)
        # Full-vreg activations (2 EUP pushes); slice AFTER activation.
        sig = jax.nn.sigmoid(gates)
        th = jnp.tanh(gates)
        i = sig[:, 0:H2]
        f = sig[:, H2:2 * H2]
        g = th[:, 2 * H2:3 * H2]
        o = sig[:, 3 * H2:4 * H2]
        c_new = f * c + i * g
        h_new = o * jnp.tanh(c_new)
        # Single full-width, lane-offset-0 store per step (step-ordered).
        rec_scr[pl.ds(s, 1), :] = h_new
        return (h_new, c_new)

    # T is small and fixed -> full unroll keeps LLO scheduling visibility.
    # TODO(synk): cap the unroll (e.g. unroll=8) if T grows beyond a few dozen.
    lax.fori_loop(0, T, step, (h0, c0), unroll=True)

    # ---- epilogue: re-pair the backward half's time axis ----
    # rec_scr row s = [h_fwd(time s) | h_bwd(time T-1-s)]; fix the bwd half with an exact
    # (T,T) reversal-permutation matmul (off the serial chain), then select per lane half.
    rec_step = rec_scr[...]                                              # (T, 2H)
    row = lax.broadcasted_iota(jnp.int32, (T, T), 0)
    col = lax.broadcasted_iota(jnp.int32, (T, T), 1)
    rev_mat = (row + col == T - 1).astype(jnp.float32)
    rec_rev = jnp.dot(rev_mat, rec_step, preferred_element_type=jnp.float32)
    lane = lax.broadcasted_iota(jnp.int32, (T, H2), 1)
    rec = jnp.where(lane < H, rec_step, rec_rev)                         # time-ordered (T, 2H)

    # ---- attention pooling ----
    ut = jnp.tanh(jnp.dot(rec, wctx_ref[...],
                          preferred_element_type=jnp.float32) + bctx_ref[...])
    # N=1 matmul replaced by VPU multiply + lane reduce.
    scores = jnp.sum(ut * uw_ref[...], axis=-1, keepdims=True)           # (T, 1)
    m = jnp.max(scores, axis=0, keepdims=True)
    e = jnp.exp(scores - m)
    denom = jnp.sum(e, axis=0, keepdims=True)
    alphas = e * pl.reciprocal(denom, approx=False)                      # exact: 1e-5 check
    alphas_ref[...] = alphas
    ctx_ref[...] = jnp.sum(rec * alphas, axis=0, keepdims=True)          # (1, 2H)
    # TODO(synk): for large T, compute the context as alphas^T (1,T) @ rec on the MXU, emit
    # alphas lane-major, and tile xproj/rec over T (v7x has only 64 MiB physical VMEM).


def doc_encoder_forward(x, packed):
    """x: (T, E) float32. Returns (context (1, 2H), alphas (T, 1))."""
    T, E = x.shape
    H2 = packed["whh"].shape[0]    # 2H
    G = packed["whh"].shape[1]     # 8H

    # Direction blend folded into the data: row t = [x_t | x_{T-1-t}] (reverse is done by
    # XLA outside the kernel).
    x2 = jnp.concatenate([x, x[::-1]], axis=1)                           # (T, 2E)

    vmem = pl.BlockSpec(memory_space=pltpu.MemorySpace.VMEM)
    out_shape = (jax.ShapeDtypeStruct((1, H2), jnp.float32),
                 jax.ShapeDtypeStruct((T, 1), jnp.float32))

    flops = (2 * T * (2 * E) * G    # blended input projection
             + 2 * T * H2 * G       # recurrent matmuls
             + 10 * T * G           # gate elementwise
             + 2 * T * T * H2       # epilogue reversal matmul
             + 2 * T * H2 * H2      # hidden2context
             + 8 * T * H2)          # attention epilogue
    transcendentals = T * (2 * G + H2) + T * H2 + T + 1
    bytes_accessed = 4 * (T * 2 * E + 2 * E * G + H2 * G + G            # inputs
                          + H2 * H2 + 3 * H2 + H2 + T                   # ctx weights + outputs
                          + 2 * T * G + 3 * T * H2)                     # scratch write+read

    fn = pl.pallas_call(
        doc_encoder_kernel,
        out_shape=out_shape,
        in_specs=[vmem] * 7,
        out_specs=(vmem, vmem),
        scratch_shapes=[pltpu.VMEM((T, G), jnp.float32),    # blended xproj (T, 8H)
                        pltpu.VMEM((T, H2), jnp.float32)],  # step-ordered recurrent (T, 2H)
        cost_estimate=pl.CostEstimate(flops=flops,
                                      transcendentals=transcendentals,
                                      bytes_accessed=bytes_accessed),
    )
    # TODO(synk): to encode many documents, batch them into the sublane axis (B<=8 per f32
    # vreg) and/or add a leading "parallel" grid axis over documents (2x on v7x's two TCs).
    return fn(x2, packed["wih"], packed["whh"], packed["b"],
              packed["wctx"], packed["bctx"], packed["uw_row"])


# ----------------------------- parameter handling -----------------------------

def init_raw_params(key, E, H):
    """PyTorch-shaped parameters: weight_ih (4H,E), weight_hh (4H,H), biases (4H,)."""
    ks = jax.random.split(key, 11)
    s = 0.1
    return {
        "w_ih_f": s * jax.random.normal(ks[0], (4 * H, E), jnp.float32),
        "w_hh_f": s * jax.random.normal(ks[1], (4 * H, H), jnp.float32),
        "b_ih_f": s * jax.random.normal(ks[2], (4 * H,), jnp.float32),
        "b_hh_f": s * jax.random.normal(ks[3], (4 * H,), jnp.float32),
        "w_ih_b": s * jax.random.normal(ks[4], (4 * H, E), jnp.float32),
        "w_hh_b": s * jax.random.normal(ks[5], (4 * H, H), jnp.float32),
        "b_ih_b": s * jax.random.normal(ks[6], (4 * H,), jnp.float32),
        "b_hh_b": s * jax.random.normal(ks[7], (4 * H,), jnp.float32),
        "uw":     jax.random.normal(ks[8], (2 * H, 1), jnp.float32),      # torch.randn
        "w_ctx":  s * jax.random.normal(ks[9], (2 * H, 2 * H), jnp.float32),
        "b_ctx":  s * jax.random.normal(ks[10], (2 * H,), jnp.float32),
    }


def pack_params(raw, H):
    """Repack PyTorch-shaped weights for the fused/lane-dense kernel layout."""
    E = raw["w_ih_f"].shape[1]

    def gate_interleave_cols(wf_t, wb_t):
        # wf_t, wb_t: (rows, 4H) with PyTorch gate order [i f g o].
        # Output (rows, 8H) with columns [i_f i_b f_f f_b g_f g_b o_f o_b].
        r = wf_t.shape[0]
        wf4 = wf_t.reshape(r, 4, H)
        wb4 = wb_t.reshape(r, 4, H)
        return jnp.stack([wf4, wb4], axis=2).reshape(r, 8 * H)

    # Blended input projection: rows 0:E (time-forward x) hit only forward-gate lanes,
    # rows E:2E (time-reversed x) hit only backward-gate lanes.
    zeros_e = jnp.zeros((E, 4 * H), jnp.float32)
    wih_top = gate_interleave_cols(raw["w_ih_f"].T, zeros_e)
    wih_bot = gate_interleave_cols(zeros_e, raw["w_ih_b"].T)
    wih_comb = jnp.concatenate([wih_top, wih_bot], axis=0)                   # (2E, 8H)

    bf = (raw["b_ih_f"] + raw["b_hh_f"]).reshape(1, 4 * H)
    bb = (raw["b_ih_b"] + raw["b_hh_b"]).reshape(1, 4 * H)
    b_comb = gate_interleave_cols(bf, bb)                                    # (1, 8H)

    zeros_h = jnp.zeros((H, 4 * H), jnp.float32)
    top = gate_interleave_cols(raw["w_hh_f"].T, zeros_h)    # h_f rows -> fwd gate lanes
    bot = gate_interleave_cols(zeros_h, raw["w_hh_b"].T)    # h_b rows -> bwd gate lanes
    whh_comb = jnp.concatenate([top, bot], axis=0)                           # (2H, 8H)

    return {
        "wih": wih_comb,
        "whh": whh_comb,
        "b": b_comb,
        "wctx": raw["w_ctx"].T,                 # (2H, 2H), right-multiplication
        "bctx": raw["b_ctx"][None, :],          # (1, 2H)
        "uw_row": raw["uw"].T,                  # (1, 2H)
    }


# ----------------------------- pure-JAX reference -----------------------------

def reference_forward(x, raw, H):
    def run_dir(xs, w_ih, w_hh, b_ih, b_hh):
        wih = w_ih.T
        whh = w_hh.T
        b = (b_ih + b_hh)[None, :]

        def cell(carry, x_t):
            h, c = carry
            g = x_t[None, :] @ wih + h @ whh + b
            i = jax.nn.sigmoid(g[:, 0:H])
            f = jax.nn.sigmoid(g[:, H:2 * H])
            gg = jnp.tanh(g[:, 2 * H:3 * H])
            o = jax.nn.sigmoid(g[:, 3 * H:4 * H])
            c = f * c + i * gg
            h = o * jnp.tanh(c)
            return (h, c), h[0]

        h0 = jnp.zeros((1, H), jnp.float32)
        _, hs = lax.scan(cell, (h0, h0), xs)
        return hs

    hf = run_dir(x, raw["w_ih_f"], raw["w_hh_f"], raw["b_ih_f"], raw["b_hh_f"])
    hb = run_dir(x[::-1], raw["w_ih_b"], raw["w_hh_b"], raw["b_ih_b"], raw["b_hh_b"])[::-1]
    rec = jnp.concatenate([hf, hb], axis=1)
    ut = jnp.tanh(rec @ raw["w_ctx"].T + raw["b_ctx"][None, :])
    scores = ut @ raw["uw"]
    alphas = jax.nn.softmax(scores, axis=0)
    context = jnp.sum(rec * alphas, axis=0, keepdims=True)
    return context, alphas


if __name__ == "__main__":
    sent_embed_size = 32   # E
    nHidden = 16           # H
    T = 8                  # number of sentences in the document

    key = jax.random.PRNGKey(0)
    k_x, k_p = jax.random.split(key)
    x = jax.random.normal(k_x, (T, sent_embed_size), jnp.float32)
    raw = init_raw_params(k_p, sent_embed_size, nHidden)
    packed = pack_params(raw, nHidden)

    context, alphas = doc_encoder_forward(x, packed)
    context, alphas = jax.block_until_ready((context, alphas))

    ref_ctx, ref_alphas = reference_forward(x, raw, nHidden)
    assert context.shape == (1, 2 * nHidden)
    assert alphas.shape == (T, 1)
    assert jnp.allclose(context, ref_ctx, atol=1e-4, rtol=1e-4)
    assert jnp.allclose(alphas, ref_alphas, atol=1e-5, rtol=1e-4)

    print("KERNEL_OK")
</pallas_src>

<mosaic_0001>
module attributes {stable_mosaic.version = 11 : i64} {
  func.func @doc_encoder_kernel(%arg0: memref<8x64xf32, #tpu.memory_space<vmem>>, %arg1: memref<64x128xf32, #tpu.memory_space<vmem>>, %arg2: memref<32x128xf32, #tpu.memory_space<vmem>>, %arg3: memref<1x128xf32, #tpu.memory_space<vmem>>, %arg4: memref<32x32xf32, #tpu.memory_space<vmem>>, %arg5: memref<1x32xf32, #tpu.memory_space<vmem>>, %arg6: memref<1x32xf32, #tpu.memory_space<vmem>>, %arg7: memref<1x32xf32, #tpu.memory_space<vmem>>, %arg8: memref<8x1xf32, #tpu.memory_space<vmem>>, %arg9: memref<8x128xf32, #tpu.memory_space<vmem>>, %arg10: memref<8x32xf32, #tpu.memory_space<vmem>>) attributes {dimension_semantics = [], scalar_prefetch = 0 : i64, scratch_operands = 2 : i64, tpu.core_type = #tpu.core_type<tc>} {
    %c0 = arith.constant 0 : index
    %c0_0 = arith.constant 0 : index
    %0 = vector.load %arg0[%c0, %c0_0] : memref<8x64xf32, #tpu.memory_space<vmem>>, vector<8x64xf32>
    %c0_1 = arith.constant 0 : index
    %c0_2 = arith.constant 0 : index
    %1 = vector.load %arg1[%c0_1, %c0_2] : memref<64x128xf32, #tpu.memory_space<vmem>>, vector<64x128xf32>
    %cst = arith.constant dense<0.000000e+00> : vector<8x128xf32>
    %2 = tpu.matmul %0, %1, %cst {dimension_numbers = #tpu.dot_dimension_numbers<[1], [0], [0], [1], [0, 0, 1, 1], [], []>} : vector<8x64xf32>, vector<64x128xf32>, vector<8x128xf32> -> vector<8x128xf32>
    %c0_3 = arith.constant 0 : index
    %c0_4 = arith.constant 0 : index
    %3 = vector.load %arg3[%c0_3, %c0_4] : memref<1x128xf32, #tpu.memory_space<vmem>>, vector<1x128xf32>
    %4 = vector.broadcast %3 : vector<1x128xf32> to vector<8x128xf32>
    %5 = arith.addf %2, %4 : vector<8x128xf32>
    %c0_5 = arith.constant 0 : index
    %c0_6 = arith.constant 0 : index
    %6 = vector.load %arg9[%c0_5, %c0_6] : memref<8x128xf32, #tpu.memory_space<vmem>>, vector<8x128xf32>
    tpu.vector_store %arg9[%c0_5, %c0_6], %5 {strides = array<i32>} : memref<8x128xf32, #tpu.memory_space<vmem>>, vector<8x128xf32>,
    %c0_7 = arith.constant 0 : index
    %c0_8 = arith.constant 0 : index
    %7 = vector.load %arg2[%c0_7, %c0_8] : memref<32x128xf32, #tpu.memory_space<vmem>>, vector<32x128xf32>
    %cst_9 = arith.constant 0.000000e+00 : f32
    %8 = vector.broadcast %cst_9 : f32 to vector<1x32xf32>
    %cst_10 = arith.constant 0.000000e+00 : f32
    %9 = vector.broadcast %cst_10 : f32 to vector<1x32xf32>
    %c0_i32 = arith.constant 0 : i32
    %10 = arith.index_cast %c0_i32 : i32 to index
    %c0_11 = arith.constant 0 : index
    %11 = vector.load %arg9[%10, %c0_11] : memref<8x128xf32, #tpu.memory_space<vmem>>, vector<1x128xf32>
    %cst_12 = arith.constant dense<0.000000e+00> : vector<1x128xf32>
    %12 = tpu.matmul %8, %7, %cst_12 {dimension_numbers = #tpu.dot_dimension_numbers<[1], [0], [0], [1], [0, 0, 1, 1], [], []>} : vector<1x32xf32>, vector<32x128xf32>, vector<1x128xf32> -> vector<1x128xf32>
    %13 = arith.addf %11, %12 : vector<1x128xf32>
    %14 = arith.negf %13 : vector<1x128xf32>
    %15 = math.exp %14 : vector<1x128xf32>
    %cst_13 = arith.constant 1.000000e+00 : f32
    %16 = vector.broadcast %cst_13 : f32 to vector<1x128xf32>
    %17 = arith.addf %16, %15 : vector<1x128xf32>
    %18 = arith.divf %16, %17 : vector<1x128xf32>
    %19 = math.tanh %13 : vector<1x128xf32>
    %20 = vector.extract_strided_slice %18 {offsets = [0, 0], sizes = [1, 32], strides = [1, 1]} : vector<1x128xf32> to vector<1x32xf32>
    %21 = vector.extract_strided_slice %18 {offsets = [0, 32], sizes = [1, 32], strides = [1, 1]} : vector<1x128xf32> to vector<1x32xf32>
    %22 = vector.extract_strided_slice %19 {offsets = [0, 64], sizes = [1, 32], strides = [1, 1]} : vector<1x128xf32> to vector<1x32xf32>
    %23 = vector.extract_strided_slice %18 {offsets = [0, 96], sizes = [1, 32], strides = [1, 1]} : vector<1x128xf32> to vector<1x32xf32>
    %24 = arith.mulf %21, %9 : vector<1x32xf32>
    %25 = arith.mulf %20, %22 : vector<1x32xf32>
    %26 = arith.addf %24, %25 : vector<1x32xf32>
    %27 = math.tanh %26 : vector<1x32xf32>
    %28 = arith.mulf %23, %27 : vector<1x32xf32>
    %29 = arith.index_cast %c0_i32 : i32 to index
    %c0_14 = arith.constant 0 : index
    %30 = vector.load %arg10[%29, %c0_14] : memref<8x32xf32, #tpu.memory_space<vmem>>, vector<1x32xf32>
    tpu.vector_store %arg10[%29, %c0_14], %28 {strides = array<i32>} : memref<8x32xf32, #tpu.memory_space<vmem>>, vector<1x32xf32>,
    %c1_i32 = arith.constant 1 : i32
    %31 = arith.index_cast %c1_i32 : i32 to index
    %c0_15 = arith.constant 0 : index
    %32 = vector.load %arg9[%31, %c0_15] : memref<8x128xf32, #tpu.memory_space<vmem>>, vector<1x128xf32>
    %cst_16 = arith.constant dense<0.000000e+00> : vector<1x128xf32>
    %33 = tpu.matmul %28, %7, %cst_16 {dimension_numbers = #tpu.dot_dimension_numbers<[1], [0], [0], [1], [0, 0, 1, 1], [], []>} : vector<1x32xf32>, vector<32x128xf32>, vector<1x128xf32> -> vector<1x128xf32>
    %34 = arith.addf %32, %33 : vector<1x128xf32>
    %35 = arith.negf %34 : vector<1x128xf32>
    %36 = math.exp %35 : vector<1x128xf32>
    %cst_17 = arith.constant 1.000000e+00 : f32
    %37 = vector.broadcast %cst_17 : f32 to vector<1x128xf32>
    %38 = arith.addf %37, %36 : vector<1x128xf32>
    %39 = arith.divf %37, %38 : vector<1x128xf32>
    %40 = math.tanh %34 : vector<1x128xf32>
    %41 = vector.extract_strided_slice %39 {offsets = [0, 0], sizes = [1, 32], strides = [1, 1]} : vector<1x128xf32> to vector<1x32xf32>
    %42 = vector.extract_strided_slice %39 {offsets = [0, 32], sizes = [1, 32], strides = [1, 1]} : vector<1x128xf32> to vector<1x32xf32>
    %43 = vector.extract_strided_slice %40 {offsets = [0, 64], sizes = [1, 32], strides = [1, 1]} : vector<1x128xf32> to vector<1x32xf32>
    %44 = vector.extract_strided_slice %39 {offsets = [0, 96], sizes = [1, 32], strides = [1, 1]} : vector<1x128xf32> to vector<1x32xf32>
    %45 = arith.mulf %42, %26 : vector<1x32xf32>
    %46 = arith.mulf %41, %43 : vector<1x32xf32>
    %47 = arith.addf %45, %46 : vector<1x32xf32>
    %48 = math.tanh %47 : vector<1x32xf32>
    %49 = arith.mulf %44, %48 : vector<1x32xf32>
    %50 = arith.index_cast %c1_i32 : i32 to index
    %c0_18 = arith.constant 0 : index
    %51 = vector.load %arg10[%50, %c0_18] : memref<8x32xf32, #tpu.memory_space<vmem>>, vector<1x32xf32>
    tpu.vector_store %arg10[%50, %c0_18], %49 {strides = array<i32>} : memref<8x32xf32, #tpu.memory_space<vmem>>, vector<1x32xf32>,
    %c2_i32 = arith.constant 2 : i32
    %52 = arith.index_cast %c2_i32 : i32 to index
    %c0_19 = arith.constant 0 : index
    %53 = vector.load %arg9[%52, %c0_19] : memref<8x128xf32, #tpu.memory_space<vmem>>, vector<1x128xf32>
    %cst_20 = arith.constant dense<0.000000e+00> : vector<1x128xf32>
    %54 = tpu.matmul %49, %7, %cst_20 {dimension_numbers = #tpu.dot_dimension_numbers<[1], [0], [0], [1], [0, 0, 1, 1], [], []>} : vector<1x32xf32>, vector<32x128xf32>, vector<1x128xf32> -> vector<1x128xf32>
    %55 = arith.addf %53, %54 : vector<1x128xf32>
    %56 = arith.negf %55 : vector<1x128xf32>
    %57 = math.exp %56 : vector<1x128xf32>
    %cst_21 = arith.constant 1.000000e+00 : f32
    %58 = vector.broadcast %cst_21 : f32 to vector<1x128xf32>
    %59 = arith.addf %58, %57 : vector<1x128xf32>
    %60 = arith.divf %58, %59 : vector<1x128xf32>
    %61 = math.tanh %55 : vector<1x128xf32>
    %62 = vector.extract_strided_slice %60 {offsets = [0, 0], sizes = [1, 32], strides = [1, 1]} : vector<1x128xf32> to vector<1x32xf32>
    %63 = vector.extract_strided_slice %60 {offsets = [0, 32], sizes = [1, 32], strides = [1, 1]} : vector<1x128xf32> to vector<1x32xf32>
    %64 = vector.extract_strided_slice %61 {offsets = [0, 64], sizes = [1, 32], strides = [1, 1]} : vector<1x128xf32> to vector<1x32xf32>
    %65 = vector.extract_strided_slice %60 {offsets = [0, 96], sizes = [1, 32], strides = [1, 1]} : vector<1x128xf32> to vector<1x32xf32>
    %66 = arith.mulf %63, %47 : vector<1x32xf32>
    %67 = arith.mulf %62, %64 : vector<1x32xf32>
    %68 = arith.addf %66, %67 : vector<1x32xf32>
    %69 = math.tanh %68 : vector<1x32xf32>
    %70 = arith.mulf %65, %69 : vector<1x32xf32>
    %71 = arith.index_cast %c2_i32 : i32 to index
    %c0_22 = arith.constant 0 : index
    %72 = vector.load %arg10[%71, %c0_22] : memref<8x32xf32, #tpu.memory_space<vmem>>, vector<1x32xf32>
    tpu.vector_store %arg10[%71, %c0_22], %70 {strides = array<i32>} : memref<8x32xf32, #tpu.memory_space<vmem>>, vector<1x32xf32>,
    %c3_i32 = arith.constant 3 : i32
    %73 = arith.index_cast %c3_i32 : i32 to index
    %c0_23 = arith.constant 0 : index
    %74 = vector.load %arg9[%73, %c0_23] : memref<8x128xf32, #tpu.memory_space<vmem>>, vector<1x128xf32>
    %cst_24 = arith.constant dense<0.000000e+00> : vector<1x128xf32>
    %75 = tpu.matmul %70, %7, %cst_24 {dimension_numbers = #tpu.dot_dimension_numbers<[1], [0], [0], [1], [0, 0, 1, 1], [], []>} : vector<1x32xf32>, vector<32x128xf32>, vector<1x128xf32> -> vector<1x128xf32>
    %76 = arith.addf %74, %75 : vector<1x128xf32>
    %77 = arith.negf %76 : vector<1x128xf32>
    %78 = math.exp %77 : vector<1x128xf32>
    %cst_25 = arith.constant 1.000000e+00 : f32
    %79 = vector.broadcast %cst_25 : f32 to vector<1x128xf32>
    %80 = arith.addf %79, %78 : vector<1x128xf32>
    %81 = arith.divf %79, %80 : vector<1x128xf32>
    %82 = math.tanh %76 : vector<1x128xf32>
    %83 = vector.extract_strided_slice %81 {offsets = [0, 0], sizes = [1, 32], strides = [1, 1]} : vector<1x128xf32> to vector<1x32xf32>
    %84 = vector.extract_strided_slice %81 {offsets = [0, 32], sizes = [1, 32], strides = [1, 1]} : vector<1x128xf32> to vector<1x32xf32>
    %85 = vector.extract_strided_slice %82 {offsets = [0, 64], sizes = [1, 32], strides = [1, 1]} : vector<1x128xf32> to vector<1x32xf32>
    %86 = vector.extract_strided_slice %81 {offsets = [0, 96], sizes = [1, 32], strides = [1, 1]} : vector<1x128xf32> to vector<1x32xf32>
    %87 = arith.mulf %84, %68 : vector<1x32xf32>
    %88 = arith.mulf %83, %85 : vector<1x32xf32>
    %89 = arith.addf %87, %88 : vector<1x32xf32>
    %90 = math.tanh %89 : vector<1x32xf32>
    %91 = arith.mulf %86, %90 : vector<1x32xf32>
    %92 = arith.index_cast %c3_i32 : i32 to index
    %c0_26 = arith.constant 0 : index
    %93 = vector.load %arg10[%92, %c0_26] : memref<8x32xf32, #tpu.memory_space<vmem>>, vector<1x32xf32>
    tpu.vector_store %arg10[%92, %c0_26], %91 {strides = array<i32>} : memref<8x32xf32, #tpu.memory_space<vmem>>, vector<1x32xf32>,
    %c4_i32 = arith.constant 4 : i32
    %94 = arith.index_cast %c4_i32 : i32 to index
    %c0_27 = arith.constant 0 : index
    %95 = vector.load %arg9[%94, %c0_27] : memref<8x128xf32, #tpu.memory_space<vmem>>, vector<1x128xf32>
    %cst_28 = arith.constant dense<0.000000e+00> : vector<1x128xf32>
    %96 = tpu.matmul %91, %7, %cst_28 {dimension_numbers = #tpu.dot_dimension_numbers<[1], [0], [0], [1], [0, 0, 1, 1], [], []>} : vector<1x32xf32>, vector<32x128xf32>, vector<1x128xf32> -> vector<1x128xf32>
    %97 = arith.addf %95, %96 : vector<1x128xf32>
    %98 = arith.negf %97 : vector<1x128xf32>
    %99 = math.exp %98 : vector<1x128xf32>
    %cst_29 = arith.constant 1.000000e+00 : f32
    %100 = vector.broadcast %cst_29 : f32 to vector<1x128xf32>
    %101 = arith.addf %100, %99 : vector<1x128xf32>
    %102 = arith.divf %100, %101 : vector<1x128xf32>
    %103 = math.tanh %97 : vector<1x128xf32>
    %104 = vector.extract_strided_slice %102 {offsets = [0, 0], sizes = [1, 32], strides = [1, 1]} : vector<1x128xf32> to vector<1x32xf32>
    %105 = vector.extract_strided_slice %102 {offsets = [0, 32], sizes = [1, 32], strides = [1, 1]} : vector<1x128xf32> to vector<1x32xf32>
    %106 = vector.extract_strided_slice %103 {offsets = [0, 64], sizes = [1, 32], strides = [1, 1]} : vector<1x128xf32> to vector<1x32xf32>
    %107 = vector.extract_strided_slice %102 {offsets = [0, 96], sizes = [1, 32], strides = [1, 1]} : vector<1x128xf32> to vector<1x32xf32>
    %108 = arith.mulf %105, %89 : vector<1x32xf32>
    %109 = arith.mulf %104, %106 : vector<1x32xf32>
    %110 = arith.addf %108, %109 : vector<1x32xf32>
    %111 = math.tanh %110 : vector<1x32xf32>
    %112 = arith.mulf %107, %111 : vector<1x32xf32>
    %113 = arith.index_cast %c4_i32 : i32 to index
    %c0_30 = arith.constant 0 : index
    %114 = vector.load %arg10[%113, %c0_30] : memref<8x32xf32, #tpu.memory_space<vmem>>, vector<1x32xf32>
    tpu.vector_store %arg10[%113, %c0_30], %112 {strides = array<i32>} : memref<8x32xf32, #tpu.memory_space<vmem>>, vector<1x32xf32>,
    %c5_i32 = arith.constant 5 : i32
    %115 = arith.index_cast %c5_i32 : i32 to index
    %c0_31 = arith.constant 0 : index
    %116 = vector.load %arg9[%115, %c0_31] : memref<8x128xf32, #tpu.memory_space<vmem>>, vector<1x128xf32>
    %cst_32 = arith.constant dense<0.000000e+00> : vector<1x128xf32>
    %117 = tpu.matmul %112, %7, %cst_32 {dimension_numbers = #tpu.dot_dimension_numbers<[1], [0], [0], [1], [0, 0, 1, 1], [], []>} : vector<1x32xf32>, vector<32x128xf32>, vector<1x128xf32> -> vector<1x128xf32>
    %118 = arith.addf %116, %117 : vector<1x128xf32>
    %119 = arith.negf %118 : vector<1x128xf32>
    %120 = math.exp %119 : vector<1x128xf32>
    %cst_33 = arith.constant 1.000000e+00 : f32
    %121 = vector.broadcast %cst_33 : f32 to vector<1x128xf32>
    %122 = arith.addf %121, %120 : vector<1x128xf32>
    %123 = arith.divf %121, %122 : vector<1x128xf32>
    %124 = math.tanh %118 : vector<1x128xf32>
    %125 = vector.extract_strided_slice %123 {offsets = [0, 0], sizes = [1, 32], strides = [1, 1]} : vector<1x128xf32> to vector<1x32xf32>
    %126 = vector.extract_strided_slice %123 {offsets = [0, 32], sizes = [1, 32], strides = [1, 1]} : vector<1x128xf32> to vector<1x32xf32>
    %127 = vector.extract_strided_slice %124 {offsets = [0, 64], sizes = [1, 32], strides = [1, 1]} : vector<1x128xf32> to vector<1x32xf32>
    %128 = vector.extract_strided_slice %123 {offsets = [0, 96], sizes = [1, 32], strides = [1, 1]} : vector<1x128xf32> to vector<1x32xf32>
    %129 = arith.mulf %126, %110 : vector<1x32xf32>
    %130 = arith.mulf %125, %127 : vector<1x32xf32>
    %131 = arith.addf %129, %130 : vector<1x32xf32>
    %132 = math.tanh %131 : vector<1x32xf32>
    %133 = arith.mulf %128, %132 : vector<1x32xf32>
    %134 = arith.index_cast %c5_i32 : i32 to index
    %c0_34 = arith.constant 0 : index
    %135 = vector.load %arg10[%134, %c0_34] : memref<8x32xf32, #tpu.memory_space<vmem>>, vector<1x32xf32>
    tpu.vector_store %arg10[%134, %c0_34], %133 {strides = array<i32>} : memref<8x32xf32, #tpu.memory_space<vmem>>, vector<1x32xf32>,
    %c6_i32 = arith.constant 6 : i32
    %136 = arith.index_cast %c6_i32 : i32 to index
    %c0_35 = arith.constant 0 : index
    %137 = vector.load %arg9[%136, %c0_35] : memref<8x128xf32, #tpu.memory_space<vmem>>, vector<1x128xf32>
    %cst_36 = arith.constant dense<0.000000e+00> : vector<1x128xf32>
    %138 = tpu.matmul %133, %7, %cst_36 {dimension_numbers = #tpu.dot_dimension_numbers<[1], [0], [0], [1], [0, 0, 1, 1], [], []>} : vector<1x32xf32>, vector<32x128xf32>, vector<1x128xf32> -> vector<1x128xf32>
    %139 = arith.addf %137, %138 : vector<1x128xf32>
    %140 = arith.negf %139 : vector<1x128xf32>
    %141 = math.exp %140 : vector<1x128xf32>
    %cst_37 = arith.constant 1.000000e+00 : f32
    %142 = vector.broadcast %cst_37 : f32 to vector<1x128xf32>
    %143 = arith.addf %142, %141 : vector<1x128xf32>
    %144 = arith.divf %142, %143 : vector<1x128xf32>
    %145 = math.tanh %139 : vector<1x128xf32>
    %146 = vector.extract_strided_slice %144 {offsets = [0, 0], sizes = [1, 32], strides = [1, 1]} : vector<1x128xf32> to vector<1x32xf32>
    %147 = vector.extract_strided_slice %144 {offsets = [0, 32], sizes = [1, 32], strides = [1, 1]} : vector<1x128xf32> to vector<1x32xf32>
    %148 = vector.extract_strided_slice %145 {offsets = [0, 64], sizes = [1, 32], strides = [1, 1]} : vector<1x128xf32> to vector<1x32xf32>
    %149 = vector.extract_strided_slice %144 {offsets = [0, 96], sizes = [1, 32], strides = [1, 1]} : vector<1x128xf32> to vector<1x32xf32>
    %150 = arith.mulf %147, %131 : vector<1x32xf32>
    %151 = arith.mulf %146, %148 : vector<1x32xf32>
    %152 = arith.addf %150, %151 : vector<1x32xf32>
    %153 = math.tanh %152 : vector<1x32xf32>
    %154 = arith.mulf %149, %153 : vector<1x32xf32>
    %155 = arith.index_cast %c6_i32 : i32 to index
    %c0_38 = arith.constant 0 : index
    %156 = vector.load %arg10[%155, %c0_38] : memref<8x32xf32, #tpu.memory_space<vmem>>, vector<1x32xf32>
    tpu.vector_store %arg10[%155, %c0_38], %154 {strides = array<i32>} : memref<8x32xf32, #tpu.memory_space<vmem>>, vector<1x32xf32>,
    %c7_i32 = arith.constant 7 : i32
    %157 = arith.index_cast %c7_i32 : i32 to index
    %c0_39 = arith.constant 0 : index
    %158 = vector.load %arg9[%157, %c0_39] : memref<8x128xf32, #tpu.memory_space<vmem>>, vector<1x128xf32>
    %cst_40 = arith.constant dense<0.000000e+00> : vector<1x128xf32>
    %159 = tpu.matmul %154, %7, %cst_40 {dimension_numbers = #tpu.dot_dimension_numbers<[1], [0], [0], [1], [0, 0, 1, 1], [], []>} : vector<1x32xf32>, vector<32x128xf32>, vector<1x128xf32> -> vector<1x128xf32>
    %160 = arith.addf %158, %159 : vector<1x128xf32>
    %161 = arith.negf %160 : vector<1x128xf32>
    %162 = math.exp %161 : vector<1x128xf32>
    %cst_41 = arith.constant 1.000000e+00 : f32
    %163 = vector.broadcast %cst_41 : f32 to vector<1x128xf32>
    %164 = arith.addf %163, %162 : vector<1x128xf32>
    %165 = arith.divf %163, %164 : vector<1x128xf32>
    %166 = math.tanh %160 : vector<1x128xf32>
    %167 = vector.extract_strided_slice %165 {offsets = [0, 0], sizes = [1, 32], strides = [1, 1]} : vector<1x128xf32> to vector<1x32xf32>
    %168 = vector.extract_strided_slice %165 {offsets = [0, 32], sizes = [1, 32], strides = [1, 1]} : vector<1x128xf32> to vector<1x32xf32>
    %169 = vector.extract_strided_slice %166 {offsets = [0, 64], sizes = [1, 32], strides = [1, 1]} : vector<1x128xf32> to vector<1x32xf32>
    %170 = vector.extract_strided_slice %165 {offsets = [0, 96], sizes = [1, 32], strides = [1, 1]} : vector<1x128xf32> to vector<1x32xf32>
    %171 = arith.mulf %168, %152 : vector<1x32xf32>
    %172 = arith.mulf %167, %169 : vector<1x32xf32>
    %173 = arith.addf %171, %172 : vector<1x32xf32>
    %174 = math.tanh %173 : vector<1x32xf32>
    %175 = arith.mulf %170, %174 : vector<1x32xf32>
    %176 = arith.index_cast %c7_i32 : i32 to index
    %c0_42 = arith.constant 0 : index
    %177 = vector.load %arg10[%176, %c0_42] : memref<8x32xf32, #tpu.memory_space<vmem>>, vector<1x32xf32>
    tpu.vector_store %arg10[%176, %c0_42], %175 {strides = array<i32>} : memref<8x32xf32, #tpu.memory_space<vmem>>, vector<1x32xf32>,
    %c8_i32 = arith.constant 8 : i32
    %c0_43 = arith.constant 0 : index
    %c0_44 = arith.constant 0 : index
    %178 = vector.load %arg10[%c0_43, %c0_44] : memref<8x32xf32, #tpu.memory_space<vmem>>, vector<8x32xf32>
    %179 = tpu.iota {dimensions = array<i32: 0>} : vector<8x8xi32>
    %180 = tpu.iota {dimensions = array<i32: 1>} : vector<8x8xi32>
    %181 = arith.addi %179, %180 : vector<8x8xi32>
    %c7_i32_45 = arith.constant 7 : i32
    %182 = vector.broadcast %c7_i32_45 : i32 to vector<8x8xi32>
    %183 = arith.cmpi eq, %181, %182 : vector<8x8xi32>
    %184 = arith.extui %183 : vector<8x8xi1> to vector<8x8xi32>
    %185 = arith.sitofp %184 : vector<8x8xi32> to vector<8x8xf32>
    %cst_46 = arith.constant dense<0.000000e+00> : vector<8x32xf32>
    %186 = tpu.matmul %185, %178, %cst_46 {dimension_numbers = #tpu.dot_dimension_numbers<[1], [0], [0], [1], [0, 0, 1, 1], [], []>} : vector<8x8xf32>, vector<8x32xf32>, vector<8x32xf32> -> vector<8x32xf32>
    %187 = tpu.iota {dimensions = array<i32: 1>} : vector<8x32xi32>
    %c16_i32 = arith.constant 16 : i32
    %188 = vector.broadcast %c16_i32 : i32 to vector<8x32xi32>
    %189 = arith.cmpi slt, %187, %188 : vector<8x32xi32>
    %190 = arith.select %189, %178, %186 : vector<8x32xi1>, vector<8x32xf32>
    %c0_47 = arith.constant 0 : index
    %c0_48 = arith.constant 0 : index
    %191 = vector.load %arg4[%c0_47, %c0_48] : memref<32x32xf32, #tpu.memory_space<vmem>>, vector<32x32xf32>
    %cst_49 = arith.constant dense<0.000000e+00> : vector<8x32xf32>
    %192 = tpu.matmul %190, %191, %cst_49 {dimension_numbers = #tpu.dot_dimension_numbers<[1], [0], [0], [1], [0, 0, 1, 1], [], []>} : vector<8x32xf32>, vector<32x32xf32>, vector<8x32xf32> -> vector<8x32xf32>
    %c0_50 = arith.constant 0 : index
    %c0_51 = arith.constant 0 : index
    %193 = vector.load %arg5[%c0_50, %c0_51] : memref<1x32xf32, #tpu.memory_space<vmem>>, vector<1x32xf32>
    %194 = vector.broadcast %193 : vector<1x32xf32> to vector<8x32xf32>
    %195 = arith.addf %192, %194 : vector<8x32xf32>
    %196 = math.tanh %195 : vector<8x32xf32>
    %c0_52 = arith.constant 0 : index
    %c0_53 = arith.constant 0 : index
    %197 = vector.load %arg6[%c0_52, %c0_53] : memref<1x32xf32, #tpu.memory_space<vmem>>, vector<1x32xf32>
    %198 = vector.broadcast %197 : vector<1x32xf32> to vector<8x32xf32>
    %199 = arith.mulf %196, %198 : vector<8x32xf32>
    %cst_54 = arith.constant dense<0.000000e+00> : vector<8xf32>
    %200 = vector.multi_reduction <add>, %199, %cst_54 [1] : vector<8x32xf32> to vector<8xf32>
    %201 = vector.shape_cast %200 : vector<8xf32> to vector<8x1xf32>
    %cst_55 = arith.constant dense<0xFF800000> : vector<1xf32>
    %202 = vector.multi_reduction <maximumf>, %201, %cst_55 [0] : vector<8x1xf32> to vector<1xf32>
    %203 = vector.shape_cast %202 : vector<1xf32> to vector<1x1xf32>
    %204 = vector.broadcast %203 : vector<1x1xf32> to vector<8x1xf32>
    %205 = arith.subf %201, %204 : vector<8x1xf32>
    %206 = math.exp %205 : vector<8x1xf32>
    %cst_56 = arith.constant dense<0.000000e+00> : vector<1xf32>
    %207 = vector.multi_reduction <add>, %206, %cst_56 [0] : vector<8x1xf32> to vector<1xf32>
    %208 = vector.shape_cast %207 : vector<1xf32> to vector<1x1xf32>
    %209 = tpu.reciprocal %208 : vector<1x1xf32> -> vector<1x1xf32>
    %210 = vector.broadcast %209 : vector<1x1xf32> to vector<8x1xf32>
    %211 = arith.mulf %206, %210 : vector<8x1xf32>
    %c0_57 = arith.constant 0 : index
    %c0_58 = arith.constant 0 : index
    %212 = vector.load %arg8[%c0_57, %c0_58] : memref<8x1xf32, #tpu.memory_space<vmem>>, vector<8x1xf32>
    tpu.vector_store %arg8[%c0_57, %c0_58], %211 {strides = array<i32>} : memref<8x1xf32, #tpu.memory_space<vmem>>, vector<8x1xf32>,
    %213 = vector.broadcast %211 : vector<8x1xf32> to vector<8x32xf32>
    %214 = arith.mulf %190, %213 : vector<8x32xf32>
    %cst_59 = arith.constant dense<0.000000e+00> : vector<32xf32>
    %215 = vector.multi_reduction <add>, %214, %cst_59 [0] : vector<8x32xf32> to vector<32xf32>
    %216 = vector.shape_cast %215 : vector<32xf32> to vector<1x32xf32>
    %c0_60 = arith.constant 0 : index
    %c0_61 = arith.constant 0 : index
    %217 = vector.load %arg7[%c0_60, %c0_61] : memref<1x32xf32, #tpu.memory_space<vmem>>, vector<1x32xf32>
    tpu.vector_store %arg7[%c0_60, %c0_61], %216 {strides = array<i32>} : memref<1x32xf32, #tpu.memory_space<vmem>>, vector<1x32xf32>,
    return
  }
}

</mosaic_0001>

<bundles_post_ra>
// kernel: tpu_custom_call.1
= control target key start
LH: loop header
LB: loop body
LE: loop exit
PB: predicated region body
PF: predicated region fallthrough
CT: control target
= control target key end

     0   :  { %14 = vsyncpa [#allocation5], 0  ;;  %s1957_s0 = inlined_call_operand.hbm [shape: f32[8,64], index: 0, kind: input, shape index: {}]   ;;  %s1958_s1 = inlined_call_operand.hbm [shape: f32[64,128], index: 1, kind: input, shape index: {}]   ;;  %s1959_s2 = inlined_call_operand.hbm [shape: f32[32,128], index: 2, kind: input, shape index: {}]   ;;  %s1960_s3 = inlined_call_operand.vmem [shape: f32[1,128], index: 3, kind: input, shape index: {}]   ;;  %s1961_s4 = inlined_call_operand.hbm [shape: f32[32,32], index: 4, kind: input, shape index: {}]   ;;  %s1962_s5 = inlined_call_operand.vmem [shape: f32[1,32], index: 5, kind: input, shape index: {}]   ;;  %s1963_s6 = inlined_call_operand.vmem [shape: f32[1,32], index: 6, kind: input, shape index: {}]   ;;  %s1964_s7 = inlined_call_operand.hbm [shape: f32[1,32], index: 7, kind: output, shape index: {0}]   ;;  %s1965_s8 = inlined_call_operand.vmem [shape: f32[8,1], index: 8, kind: output, shape index: {1}]  }
   0x1   :  { %15 = vsyncpa [#allocation8], 0 }
   0x2   :  { %16 = vsyncpa [#allocation11], 0 }
   0x3   :  { %17 = vsyncpa [#allocation6], 0  ;;  %s1701_s27 = smov [#allocation7]   ;;  %s1583_s9 = scalar_lea.hbm %s1958_s1, 1024 }
   0x4   :  { %s33_s28 = sshll.u32 %s1701_s27, 4  ;;  %p1584_p0 = scmp.ne.s32.totalorder %s1958_s1, %s1583_s9  ;;  %s34_s28 = int_to_ptr.vmem [resolvable:$true] %s33_s28 }
   0x5   :  { %p1587_p1 = scmp.lt.u32.totalorder %s1583_s9, %s1958_s1 }
   0x7   :  { %p1589_p2 = pnand %p1587_p1, %p1584_p0 }
   0x9   :  { %1592 = shalt.err (!%p1589_p2)
}
   0xa   :  { %s1593_s14 = scalar_lea.vmem %s34_s28, 1024  ;;  %p1598_p4 = scmp.lt.s32.totalorder %s34_s28, %s34_s28 }
   0xb   :  { %p1594_p3 = scmp.ne.s32.totalorder %s34_s28, %s1593_s14  ;;  %p1599_p5 = scmp.lt.s32.totalorder %s1593_s14, %s1593_s14 }
   0xd   :  { %p1600_p6 = por %p1599_p5, %p1598_p4 }
   0xf   :  { %p1601_p7 = pnand %p1600_p6, %p1594_p3 }
  0x11   :  { %1604 = shalt.err (!%p1601_p7)
}
  0x12   :  { %s1702_s15 = smov 128   ;;  %s1703_s16 = smov 8  }
  0x13   :  { %39 = dma.hbm_to_vmem [thread:$0]  %s1958_s1, 1024, %s34_s28, [#allocation8], %s1702_s15, %s1702_s15, %s1703_s16  }
  0x14   :  { %s1704_s19 = smov [#allocation4]   ;;  %s1705_s21 = smov [#allocation9]  }
  0x15   :  { %s24_s20 = sshll.u32 %s1704_s19, 4  ;;  %s45_s22 = sshll.u32 %s1705_s21, 4  ;;  %s25_s20 = int_to_ptr.vmem [resolvable:$true] %s24_s20  ;;  %s46_s22 = int_to_ptr.vmem [resolvable:$true] %s45_s22 }
  0x16   :  { %s1605_s25 = scalar_lea.hbm %s1957_s0, 128 }
  0x17   :  { %p1606_p8 = scmp.ne.s32.totalorder %s1957_s0, %s1605_s25  ;;  %p1609_p9 = scmp.lt.u32.totalorder %s1605_s25, %s1957_s0 }
  0x19   :  { %p1611_p10 = pnand %p1609_p9, %p1606_p8 }
  0x1b   :  { %1614 = shalt.err (!%p1611_p10)
}
  0x1c   :  { %s1615_s1 = scalar_lea.vmem %s25_s20, 128  ;;  %p1620_p12 = scmp.lt.s32.totalorder %s25_s20, %s25_s20 }
  0x1d   :  { %p1616_p11 = scmp.ne.s32.totalorder %s25_s20, %s1615_s1  ;;  %p1621_p13 = scmp.lt.s32.totalorder %s1615_s1, %s1615_s1 }
  0x1f   :  { %p1622_p0 = por %p1621_p13, %p1620_p12 }
  0x21   :  { %p1623_p1 = pnand %p1622_p0, %p1616_p11 }
  0x23   :  { %1626 = shalt.err (!%p1623_p1)
}
  0x24   :  { %27 = dma.hbm_to_vmem [thread:$0]  %s1957_s0, 128, %s25_s20, [#allocation5]  }
  0x25   :  { %s1627_s12 = scalar_lea.hbm %s1959_s2, 512 }
  0x26   :  { %p1628_p2 = scmp.ne.s32.totalorder %s1959_s2, %s1627_s12  ;;  %p1631_p3 = scmp.lt.u32.totalorder %s1627_s12, %s1959_s2 }
  0x28   :  { %p1633_p4 = pnand %p1631_p3, %p1628_p2 }
  0x2a   :  { %1636 = shalt.err (!%p1633_p4)
}
  0x2b   :  { %s1637_s19 = scalar_lea.vmem %s46_s22, 512  ;;  %p1642_p6 = scmp.lt.s32.totalorder %s46_s22, %s46_s22 }
  0x2c   :  { %p1638_p5 = scmp.ne.s32.totalorder %s46_s22, %s1637_s19  ;;  %p1643_p7 = scmp.lt.s32.totalorder %s1637_s19, %s1637_s19 }
  0x2e   :  { %p1644_p8 = por %p1643_p7, %p1642_p6 }
  0x30   :  { %p1645_p9 = pnand %p1644_p8, %p1638_p5 }
  0x32   :  { %1648 = shalt.err (!%p1645_p9)
}
  0x33   :  { %51 = dma.hbm_to_vmem [thread:$0]  %s1959_s2, 512, %s46_s22, [#allocation8], %s1702_s15, %s1702_s15, %s1703_s16  }
  0x34   :  { %s1706_s21 = smov [#allocation10]   ;;  %s1649_s26 = scalar_lea.hbm %s1961_s4, 512 }
  0x35   :  { %s59_s23 = sshll.u32 %s1706_s21, 4  ;;  %p1650_p10 = scmp.ne.s32.totalorder %s1961_s4, %s1649_s26  ;;  %s60_s23 = int_to_ptr.vmem [resolvable:$true] %s59_s23 }
  0x36   :  { %p1653_p11 = scmp.lt.u32.totalorder %s1649_s26, %s1961_s4 }
  0x38   :  { %p1655_p12 = pnand %p1653_p11, %p1650_p10 }
  0x3a   :  { %1658 = shalt.err (!%p1655_p12)
}
  0x3b   :  { %s1659_s28 = scalar_lea.vmem %s60_s23, 512  ;;  %p1664_p0 = scmp.lt.s32.totalorder %s60_s23, %s60_s23 }
  0x3c   :  { %p1660_p13 = scmp.ne.s32.totalorder %s60_s23, %s1659_s28  ;;  %p1665_p1 = scmp.lt.s32.totalorder %s1659_s28, %s1659_s28 }
  0x3e   :  { %p1666_p2 = por %p1665_p1, %p1664_p0 }
  0x40   :  { %p1667_p3 = pnand %p1666_p2, %p1660_p13 }
  0x42   :  { %1670 = shalt.err (!%p1667_p3)
}
  0x43   :  { %65 = dma.hbm_to_vmem [thread:$0]  %s1961_s4, 512, %s60_s23, [#allocation11], %s1702_s15, %s1702_s15, %s1703_s16  }
  0x44   :  { %1693 = dma.done.wait [#allocation5], 128  }
  0x45   :  { %1694 = vsyncadd [#allocation5], 4294967168 }
  0x46   :  { %1695 = dma.done.wait [#allocation8], 1536  }
  0x47   :  { %1696 = vsyncadd [#allocation8], 4294965760 }
  0x48   :  { %1697 = dma.done.wait [#allocation11], 512  }
  0x49   :  { %1698 = vsyncadd [#allocation11], 4294966784  ;;  %v1707_v0 = vmov 0.0|0.0   ;;  %vm1708_vm0 = vmmov 0   ;;  %v1709_v1 = vmov 0.0   ;;  %v83_v2 = vld [vmem:[#allocation7] sm:$0xff] }
  0x4a   :  { %1435 = vmatprep.subr.bf16.mxu0 %v1707_v0  ;;  %1328 = vmatprep.mubr.msk.f32.mxu0 %vm1708_vm0, %v1709_v1  ;;  %v84_v3 = vld [vmem:[#allocation7 + $0x8] sm:$0xff]  ;;  %v85_v4 = vld [vmem:[#allocation7 + $0x10] sm:$0xff]  ;;  %v86_v6 = vld [vmem:[#allocation7 + $0x18] sm:$0xff]  ;;  %vm98_vm1 = vcmask 523264   ;;  %s1710_s16 = smov 64   ;;  %vm281_vm2 = vcmask 253952  }
  0x4b   :  { %1447 = vmatprep.subr.bf16.mxu1 %v1707_v0  ;;  %1339 = vmatprep.mubr.msk.f32.mxu1 %vm1708_vm0, %v1709_v1  ;;  %v1436_v5 = vpack.c.bf16 %v84_v3, %v83_v2  ;;  %v1439_v7 = vpack.c.bf16 %v86_v6, %v85_v4  ;;  %v173_v8 = vld [vmem:[#allocation9] sm:$0xff]  ;;  %v174_v9 = vld [vmem:[#allocation9 + $0x8] sm:$0xff]  ;;  %v175_v10 = vld [vmem:[#allocation9 + $0x10] sm:$0xff]  ;;  %vm178_vm3 = vcmask 261120   ;;  %vm1013_vm5 = vcmask 64512   ;;  %s1712_s13 = smov [#allocation12]  }
  0x4c   :  { %v87_v11 = vld [vmem:[#allocation7 + $0x20] sm:$0xff]  ;;  %v88_v12 = vld [vmem:[#allocation7 + $0x28] sm:$0xff]  ;;  %v1822_v13 = vpack.c.bf16 %v174_v9, %v173_v8  ;;  %v176_v14 = vld [vmem:[#allocation9 + $0x18] sm:$0xff]  ;;  %vm1202_vm7 = vcmask 7168   ;;  %s1219_s14 = sshll.u32 %s1712_s13, 4  ;;  %s1220_s14 = int_to_ptr.vmem [resolvable:$true] %s1219_s14 }
  0x4d   :  { %1437 = vmatpush3.bf16.msra.mxu0 %v1436_v5  ;;  %v1825_v15 = vpack.c.bf16 %v176_v14, %v175_v10  ;;  %v1442_v16 = vpack.c.bf16 %v88_v12, %v87_v11  ;;  %v89_v17 = vld [vmem:[#allocation7 + $0x30] sm:$0xff]  ;;  %v90_v18 = vld [vmem:[#allocation7 + $0x38] sm:$0xff]  ;;  %v1234_v23 = vld [vmem:[%s1960_s3] ss:$0 sm:$0xff]  ;;  %s1711_s3 = smov 32   ;;  %s1671_s17 = scalar_lea.vmem %s1220_s14, 16 }
  0x4e   :  { %1438 = vmatprep.subr.bf16.mxu0 %v1707_v0  ;;  %1449 = vmatpush3.bf16.msra.mxu1 %v1822_v13  ;;  %v1445_v19 = vpack.c.bf16 %v90_v18, %v89_v17  ;;  %v82_v20 = vld [vmem:[#allocation4] sm:$0xff]  ;;  %p1672_p4 = scmp.ne.s32.totalorder %s1220_s14, %s1671_s17  ;;  %s1675_s18 = scalar_lea.vmem %s1220_s14, 32 }
  0x4f   :  { %1450 = vmatprep.subr.bf16.mxu1 %v1707_v0  ;;  %p1676_p5 = scmp.lt.s32.totalorder %s1220_s14, %s1220_s14  ;;  %p1677_p6 = scmp.lt.s32.totalorder %s1675_s18, %s1671_s17 }
  0x51   :  { %1440 = vmatpush3.bf16.msra.mxu0 %v1439_v7  ;;  %p1678_p7 = por %p1677_p6, %p1676_p5 }
  0x52   :  { %1441 = vmatprep.subr.bf16.mxu0 %v1707_v0  ;;  %1452 = vmatpush3.bf16.msra.mxu1 %v1825_v15 }
  0x53   :  { %1453 = vmatprep.subr.bf16.mxu1 %v1707_v0  ;;  %p1679_p8 = pnand %p1678_p7, %p1672_p4 }
  0x55   :  { %1443 = vmatpush3.bf16.msra.mxu0 %v1442_v16  ;;  %1340 = vmatmul.mubr.f32.vlgmr.msra.gmra.mrb[0].mxu1 %v1709_v1 }
  0x56   :  { %1444 = vmatprep.subr.bf16.mxu0 %v1707_v0  ;;  %1455 = vmatpush3.bf16.msra.mxu1 %v1822_v13 }
  0x57   :  { %1350 = vmatprep.mubr.msk.f32.mxu1 %vm1708_vm0, %v1709_v1  ;;  %1456 = vmatprep.subr.bf16.mxu1 %v1707_v0 }
  0x59   :  { %1446 = vmatpush3.bf16.msra.mxu0 %v1445_v19 }
  0x5a   :  { %1459 = vmatprep.subr.bf16.mxu0 %v1707_v0  ;;  %1458 = vmatpush3.bf16.msra.mxu1 %v1825_v15 }
  0x5b   :  { %1465 = vmatprep.subr.bf16.mxu1 %v1707_v0 }
  0x5c   :  { %1329 = vmatmul.mubr.msk.f32.vlgmr.msra.gmra.mrb[0].mxu0 %vm98_vm1, %v82_v20 }
  0x5d   :  { %1461 = vmatpush3.bf16.msra.mxu0 %v1822_v13  ;;  %1361 = vmatprep.mubr.msk.f32.mxu0 %vm1708_vm0, %v1709_v1 }
  0x5e   :  { %1462 = vmatprep.subr.bf16.mxu0 %v1707_v0 }
  0x61   :  { %1464 = vmatpush3.bf16.msra.mxu0 %v1825_v15 }
  0x62   :  { %1471 = vmatprep.subr.bf16.mxu0 %v1707_v0 }
 0x128   :  { %v248_v21 = vpop.f32.mrb[0].mxu1 }
 0x129   :  { %v1341_v22 = vpop.f32.mrb[1].mxu1 }
 0x12f   :  { %v168_v24 = vpop.f32.mrb[0].mxu0 }
 0x130   :  { %v169_v25 = vadd.f32 %v1234_v23, %v168_v24  ;;  %v1330_v26 = vpop.f32.mrb[1].mxu0 }
 0x132   :  { %172 = vst [vmem:[#allocation2] sm:$0xff] %v169_v25 }
 0x139   :  { %v177_v27 = vld [vmem:[#allocation2] sm:$0x1]  ;;  %v283_v43 = vld [vmem:[#allocation2 + $0x1] sm:$0x1]  ;;  %v386_v61 = vld [vmem:[#allocation2 + $0x2] sm:$0x1] }
 0x13a   :  { %v252_v28 = vadd.f32 %v248_v21, %v177_v27  ;;  %v489_v19 = vld [vmem:[#allocation2 + $0x3] sm:$0x1] }
 0x13c   :  { %1513 = vtanh.f32 %v252_v28  ;;  %v1236_v30 = vmul.f32 -1.442695, %v252_v28 }
 0x13e   :  { %1515 = vpow2.f32 %v1236_v30 }
 0x146   :  { %v1514_v29 = vpop.eup %1513 }
 0x147   :  { %262 = vrot.lane.b32.xlu0 %v1514_v29, %s1710_s16 }
 0x148   :  { %v1516_v31 = vpop.eup %1515 }
 0x149   :  { %v256_v32 = vadd.f32 1.0, %v1516_v31 }
 0x14b   :  { %1517 = vrcp.f32 %v256_v32 }
 0x155   :  { %v1518_v33 = vpop.eup %1517 }
 0x156   :  { %v260_v36 = vmul.f32 0.0, %v1518_v33 }
 0x1b9   :  { %v263_v34 = vpop.permute.xlu0 %262 }
 0x1ba   :  { %v265_v35 = vmul.f32 %v1518_v33, %v263_v34 }
 0x1bc   :  { %267 = vrot.lane.b32.xlu0 %v265_v35, %s1711_s3 }
 0x22e   :  { %v268_v37 = vpop.permute.xlu0 %267 }
 0x22f   :  { %v270_v38 = vadd.f32 %v268_v37, %v260_v36  ;;  %v592_v37 = vld [vmem:[#allocation2 + $0x4] sm:$0x1] }
 0x231   :  { %1519 = vtanh.f32 %v270_v38 }
 0x23b   :  { %v1520_v39 = vpop.eup %1519 }
 0x23c   :  { %273 = vrot.lane.b32.xlu1 %v1520_v39, %s1710_s16 }
 0x2ae   :  { %v274_v40 = vpop.permute.xlu1 %273 }
 0x2af   :  { %v276_v41 = vmul.f32 %v1518_v33, %v274_v40 }
 0x2b1   :  { %278 = vrot.lane.b32.xlu1 %v276_v41, %s1711_s3 }
 0x323   :  { %v279_v42 = vpop.permute.xlu1 %278 }
 0x324   :  { %282 = vst.msk [vmem:[#allocation3] sm:$0x1] %vm281_vm2, %v279_v42  ;;  %1351 = vmatmul.mubr.msk.f32.vlgmr.msra.gmra.mrb[2].mxu1 %vm178_vm3, %v279_v42 }
 0x325   :  { %1467 = vmatpush3.bf16.msra.mxu1 %v1822_v13  ;;  %1372 = vmatprep.mubr.msk.f32.mxu1 %vm1708_vm0, %v1709_v1 }
 0x326   :  { %1468 = vmatprep.subr.bf16.mxu1 %v1707_v0 }
 0x329   :  { %1470 = vmatpush3.bf16.msra.mxu1 %v1825_v15 }
 0x32a   :  { %1477 = vmatprep.subr.bf16.mxu1 %v1707_v0 }
 0x3f7   :  { %v352_v44 = vpop.f32.mrb[2].mxu1 }
 0x3f8   :  { %v356_v45 = vadd.f32 %v352_v44, %v283_v43  ;;  %v1352_v46 = vpop.f32.mrb[3].mxu1 }
 0x3fa   :  { %1521 = vtanh.f32 %v356_v45  ;;  %v1238_v48 = vmul.f32 -1.442695, %v356_v45 }
 0x3fc   :  { %1523 = vpow2.f32 %v1238_v48 }
 0x404   :  { %v1522_v47 = vpop.eup %1521 }
 0x405   :  { %366 = vrot.lane.b32.xlu0 %v1522_v47, %s1710_s16 }
 0x406   :  { %v1524_v49 = vpop.eup %1523 }
 0x407   :  { %v360_v50 = vadd.f32 1.0, %v1524_v49 }
 0x409   :  { %1525 = vrcp.f32 %v360_v50 }
 0x413   :  { %v1526_v51 = vpop.eup %1525 }
 0x414   :  { %v364_v54 = vmul.f32 %v1526_v51, %v270_v38 }
 0x477   :  { %v367_v52 = vpop.permute.xlu0 %366 }
 0x478   :  { %v369_v53 = vmul.f32 %v1526_v51, %v367_v52 }
 0x47a   :  { %371 = vrot.lane.b32.xlu1 %v369_v53, %s1711_s3 }
 0x4ec   :  { %v372_v55 = vpop.permute.xlu1 %371 }
 0x4ed   :  { %v374_v56 = vadd.f32 %v372_v55, %v364_v54  ;;  %v695_v55 = vld [vmem:[#allocation2 + $0x5] sm:$0x1] }
 0x4ef   :  { %1527 = vtanh.f32 %v374_v56 }
 0x4f9   :  { %v1528_v57 = vpop.eup %1527 }
 0x4fa   :  { %377 = vrot.lane.b32.xlu0 %v1528_v57, %s1710_s16 }
 0x56c   :  { %v378_v58 = vpop.permute.xlu0 %377 }
 0x56d   :  { %v380_v59 = vmul.f32 %v1526_v51, %v378_v58 }
 0x56f   :  { %382 = vrot.lane.b32.xlu1 %v380_v59, %s1711_s3 }
 0x5e1   :  { %v383_v60 = vpop.permute.xlu1 %382 }
 0x5e2   :  { %385 = vst.msk [vmem:[#allocation3 + $0x1] sm:$0x1] %vm281_vm2, %v383_v60  ;;  %1362 = vmatmul.mubr.msk.f32.vlgmr.msra.gmra.mrb[2].mxu0 %vm178_vm3, %v383_v60 }
 0x5e3   :  { %1473 = vmatpush3.bf16.msra.mxu0 %v1822_v13  ;;  %1383 = vmatprep.mubr.msk.f32.mxu0 %vm1708_vm0, %v1709_v1 }
 0x5e4   :  { %1474 = vmatprep.subr.bf16.mxu0 %v1707_v0 }
 0x5e7   :  { %1476 = vmatpush3.bf16.msra.mxu0 %v1825_v15 }
 0x5e8   :  { %1483 = vmatprep.subr.bf16.mxu0 %v1707_v0 }
 0x6b5   :  { %v455_v62 = vpop.f32.mrb[2].mxu0 }
 0x6b6   :  { %v459_v63 = vadd.f32 %v455_v62, %v386_v61  ;;  %v1363_v2 = vpop.f32.mrb[3].mxu0 }
 0x6b8   :  { %1529 = vtanh.f32 %v459_v63  ;;  %v1240_v4 = vmul.f32 -1.442695, %v459_v63 }
 0x6ba   :  { %1531 = vpow2.f32 %v1240_v4 }
 0x6c2   :  { %v1530_v3 = vpop.eup %1529 }
 0x6c3   :  { %469 = vrot.lane.b32.xlu0 %v1530_v3, %s1710_s16 }
 0x6c4   :  { %v1532_v5 = vpop.eup %1531 }
 0x6c5   :  { %v463_v6 = vadd.f32 1.0, %v1532_v5 }
 0x6c7   :  { %1533 = vrcp.f32 %v463_v6 }
 0x6d1   :  { %v1534_v7 = vpop.eup %1533 }
 0x6d2   :  { %v467_v10 = vmul.f32 %v1534_v7, %v374_v56 }
 0x735   :  { %v470_v8 = vpop.permute.xlu0 %469 }
 0x736   :  { %v472_v9 = vmul.f32 %v1534_v7, %v470_v8 }
 0x738   :  { %474 = vrot.lane.b32.xlu1 %v472_v9, %s1711_s3  ;;  %v798_v9 = vld [vmem:[#allocation2 + $0x6] sm:$0x1] }
 0x7aa   :  { %v475_v11 = vpop.permute.xlu1 %474 }
 0x7ab   :  { %v477_v12 = vadd.f32 %v475_v11, %v467_v10 }
 0x7ad   :  { %1535 = vtanh.f32 %v477_v12 }
 0x7b7   :  { %v1536_v14 = vpop.eup %1535 }
 0x7b8   :  { %480 = vrot.lane.b32.xlu0 %v1536_v14, %s1710_s16 }
 0x82a   :  { %v481_v16 = vpop.permute.xlu0 %480 }
 0x82b   :  { %v483_v17 = vmul.f32 %v1534_v7, %v481_v16 }
 0x82d   :  { %485 = vrot.lane.b32.xlu1 %v483_v17, %s1711_s3 }
 0x89f   :  { %v486_v18 = vpop.permute.xlu1 %485 }
 0x8a0   :  { %488 = vst.msk [vmem:[#allocation3 + $0x2] sm:$0x1] %vm281_vm2, %v486_v18  ;;  %1373 = vmatmul.mubr.msk.f32.vlgmr.msra.gmra.mrb[4].mxu1 %vm178_vm3, %v486_v18 }
 0x8a1   :  { %1479 = vmatpush3.bf16.msra.mxu1 %v1822_v13  ;;  %1394 = vmatprep.mubr.msk.f32.mxu1 %vm1708_vm0, %v1709_v1 }
 0x8a2   :  { %1480 = vmatprep.subr.bf16.mxu1 %v1707_v0 }
 0x8a5   :  { %1482 = vmatpush3.bf16.msra.mxu1 %v1825_v15 }
 0x8a6   :  { %1489 = vmatprep.subr.bf16.mxu1 %v1707_v0 }
 0x973   :  { %v558_v20 = vpop.f32.mrb[4].mxu1 }
 0x974   :  { %v562_v21 = vadd.f32 %v558_v20, %v489_v19  ;;  %v1374_v22 = vpop.f32.mrb[5].mxu1 }
 0x976   :  { %1537 = vtanh.f32 %v562_v21  ;;  %v1242_v24 = vmul.f32 -1.442695, %v562_v21 }
 0x978   :  { %1539 = vpow2.f32 %v1242_v24 }
 0x980   :  { %v1538_v23 = vpop.eup %1537 }
 0x981   :  { %572 = vrot.lane.b32.xlu0 %v1538_v23, %s1710_s16 }
 0x982   :  { %v1540_v25 = vpop.eup %1539 }
 0x983   :  { %v566_v26 = vadd.f32 1.0, %v1540_v25 }
 0x985   :  { %1541 = vrcp.f32 %v566_v26 }
 0x98f   :  { %v1542_v27 = vpop.eup %1541 }
 0x990   :  { %v570_v30 = vmul.f32 %v1542_v27, %v477_v12 }
 0x9f3   :  { %v573_v28 = vpop.permute.xlu0 %572 }
 0x9f4   :  { %v575_v29 = vmul.f32 %v1542_v27, %v573_v28 }
 0x9f6   :  { %577 = vrot.lane.b32.xlu1 %v575_v29, %s1711_s3  ;;  %v901_v29 = vld [vmem:[#allocation2 + $0x7] sm:$0x1] }
 0xa68   :  { %v578_v31 = vpop.permute.xlu1 %577 }
 0xa69   :  { %v580_v32 = vadd.f32 %v578_v31, %v570_v30 }
 0xa6b   :  { %1543 = vtanh.f32 %v580_v32 }
 0xa75   :  { %v1544_v33 = vpop.eup %1543 }
 0xa76   :  { %583 = vrot.lane.b32.xlu0 %v1544_v33, %s1710_s16 }
 0xae8   :  { %v584_v34 = vpop.permute.xlu0 %583 }
 0xae9   :  { %v586_v35 = vmul.f32 %v1542_v27, %v584_v34 }
 0xaeb   :  { %588 = vrot.lane.b32.xlu1 %v586_v35, %s1711_s3 }
 0xb5d   :  { %v589_v36 = vpop.permute.xlu1 %588 }
 0xb5e   :  { %591 = vst.msk [vmem:[#allocation3 + $0x3] sm:$0x1] %vm281_vm2, %v589_v36  ;;  %1384 = vmatmul.mubr.msk.f32.vlgmr.msra.gmra.mrb[4].mxu0 %vm178_vm3, %v589_v36 }
 0xb5f   :  { %1485 = vmatpush3.bf16.msra.mxu0 %v1822_v13  ;;  %1405 = vmatprep.mubr.msk.f32.mxu0 %vm1708_vm0, %v1709_v1 }
 0xb60   :  { %1486 = vmatprep.subr.bf16.mxu0 %v1707_v0 }
 0xb63   :  { %1488 = vmatpush3.bf16.msra.mxu0 %v1825_v15 }
 0xb64   :  { %1419 = vmatprep.subr.mxu0 %v1709_v1 }
 0xc31   :  { %v661_v38 = vpop.f32.mrb[4].mxu0 }
 0xc32   :  { %v665_v39 = vadd.f32 %v661_v38, %v592_v37  ;;  %v1385_v40 = vpop.f32.mrb[5].mxu0 }
 0xc34   :  { %1545 = vtanh.f32 %v665_v39  ;;  %v1244_v42 = vmul.f32 -1.442695, %v665_v39 }
 0xc36   :  { %1547 = vpow2.f32 %v1244_v42 }
 0xc3e   :  { %v1546_v41 = vpop.eup %1545 }
 0xc3f   :  { %675 = vrot.lane.b32.xlu0 %v1546_v41, %s1710_s16 }
 0xc40   :  { %v1548_v43 = vpop.eup %1547 }
 0xc41   :  { %v669_v44 = vadd.f32 1.0, %v1548_v43 }
 0xc43   :  { %1549 = vrcp.f32 %v669_v44  ;;  %v1089_v44 = vld [vmem:[#allocation10] sm:$0xff] }
 0xc4d   :  { %v1550_v45 = vpop.eup %1549 }
 0xc4e   :  { %v673_v48 = vmul.f32 %v1550_v45, %v580_v32 }
 0xcb1   :  { %v676_v46 = vpop.permute.xlu0 %675 }
 0xcb2   :  { %v678_v47 = vmul.f32 %v1550_v45, %v676_v46  ;;  %v1091_v46 = vld [vmem:[#allocation10 + $0x10] sm:$0xff] }
 0xcb4   :  { %680 = vrot.lane.b32.xlu1 %v678_v47, %s1711_s3 }
 0xd26   :  { %v681_v49 = vpop.permute.xlu1 %680 }
 0xd27   :  { %v683_v50 = vadd.f32 %v681_v49, %v673_v48  ;;  %v1092_v49 = vld [vmem:[#allocation10 + $0x18] sm:$0xff] }
 0xd29   :  { %1551 = vtanh.f32 %v683_v50 }
 0xd33   :  { %v1552_v51 = vpop.eup %1551 }
 0xd34   :  { %686 = vrot.lane.b32.xlu0 %v1552_v51, %s1710_s16  ;;  %v1499_v51 = vpack.c.bf16 %v1092_v49, %v1091_v46 }
 0xda6   :  { %v687_v52 = vpop.permute.xlu0 %686 }
 0xda7   :  { %v689_v53 = vmul.f32 %v1550_v45, %v687_v52  ;;  %v1090_v45 = vld [vmem:[#allocation10 + $0x8] sm:$0xff]  ;;  %v1005_v52 = vlaneseq }
 0xda8   :  { %v1496_v48 = vpack.c.bf16 %v1090_v45, %v1089_v44 }
 0xda9   :  { %691 = vrot.lane.b32.xlu1 %v689_v53, %s1711_s3  ;;  %v1006_v53 = vshrl.u32 %v1005_v52, 7 }
 0xe1b   :  { %v692_v54 = vpop.permute.xlu1 %691 }
 0xe1c   :  { %694 = vst.msk [vmem:[#allocation3 + $0x4] sm:$0x1] %vm281_vm2, %v692_v54  ;;  %1395 = vmatmul.mubr.msk.f32.vlgmr.msra.gmra.mrb[6].mxu1 %vm178_vm3, %v692_v54  ;;  %v1008_v54 = vand.u32 127, %v1005_v52 }
 0xe1d   :  { %1491 = vmatpush3.bf16.msra.mxu1 %v1822_v13  ;;  %1416 = vmatprep.mubr.msk.f32.mxu1 %vm1708_vm0, %v1709_v1 }
 0xe1e   :  { %1492 = vmatprep.subr.bf16.mxu1 %v1707_v0  ;;  %vm1087_vm6 = vcmp.lt.s32.totalorder %v1008_v54, 16 }
 0xe21   :  { %1494 = vmatpush3.bf16.msra.mxu1 %v1825_v15 }
 0xe22   :  { %1495 = vmatprep.subr.bf16.mxu1 %v1707_v0 }
 0xeef   :  { %v764_v56 = vpop.f32.mrb[6].mxu1 }
 0xef0   :  { %v768_v57 = vadd.f32 %v764_v56, %v695_v55  ;;  %v1396_v58 = vpop.f32.mrb[7].mxu1  ;;  %v1009_v56 = vadd.s32 %v1008_v54, %v1006_v53 }
 0xef2   :  { %1553 = vtanh.f32 %v768_v57  ;;  %v1246_v60 = vmul.f32 -1.442695, %v768_v57  ;;  %vm1010_vm4 = vcmp.eq.s32.totalorder %v1009_v56, 7 }
 0xef3   :  { %v1251_v57 = vsel %vm1010_vm4, 1.0, %v1709_v1 }
 0xef4   :  { %1555 = vpow2.f32 %v1246_v60 }
 0xefc   :  { %v1554_v59 = vpop.eup %1553 }
 0xefd   :  { %778 = vrot.lane.b32.xlu0 %v1554_v59, %s1710_s16 }
 0xefe   :  { %v1556_v13 = vpop.eup %1555 }
 0xeff   :  { %v772_v61 = vadd.f32 1.0, %v1556_v13 }
 0xf01   :  { %1557 = vrcp.f32 %v772_v61 }
 0xf0b   :  { %v1558_v62 = vpop.eup %1557 }
 0xf0c   :  { %v776_v15 = vmul.f32 %v1558_v62, %v683_v50 }
 0xf6f   :  { %v779_v63 = vpop.permute.xlu0 %778 }
 0xf70   :  { %v781_v2 = vmul.f32 %v1558_v62, %v779_v63 }
 0xf72   :  { %783 = vrot.lane.b32.xlu1 %v781_v2, %s1711_s3 }
 0xfe4   :  { %v784_v3 = vpop.permute.xlu1 %783 }
 0xfe5   :  { %v786_v4 = vadd.f32 %v784_v3, %v776_v15 }
 0xfe7   :  { %1559 = vtanh.f32 %v786_v4 }
 0xff1   :  { %v1560_v5 = vpop.eup %1559 }
 0xff2   :  { %789 = vrot.lane.b32.xlu0 %v1560_v5, %s1710_s16 }
0x1064   :  { %v790_v6 = vpop.permute.xlu0 %789 }
0x1065   :  { %v792_v7 = vmul.f32 %v1558_v62, %v790_v6 }
0x1067   :  { %794 = vrot.lane.b32.xlu1 %v792_v7, %s1711_s3 }
0x10d9   :  { %v795_v8 = vpop.permute.xlu1 %794 }
0x10da   :  { %797 = vst.msk [vmem:[#allocation3 + $0x5] sm:$0x1] %vm281_vm2, %v795_v8  ;;  %1406 = vmatmul.mubr.msk.f32.vlgmr.msra.gmra.mrb[6].mxu0 %vm178_vm3, %v795_v8 }
0x10db   :  { %1421 = vmatprep.mubr.msk.f32.mxu0 %vm1708_vm0, %v1709_v1 }
0x11ad   :  { %v867_v10 = vpop.f32.mrb[6].mxu0 }
0x11ae   :  { %v871_v11 = vadd.f32 %v867_v10, %v798_v9  ;;  %v1407_v12 = vpop.f32.mrb[7].mxu0 }
0x11b0   :  { %1561 = vtanh.f32 %v871_v11  ;;  %v1248_v16 = vmul.f32 -1.442695, %v871_v11 }
0x11b2   :  { %1563 = vpow2.f32 %v1248_v16 }
0x11ba   :  { %v1562_v14 = vpop.eup %1561 }
0x11bb   :  { %881 = vrot.lane.b32.xlu0 %v1562_v14, %s1710_s16 }
0x11bc   :  { %v1564_v17 = vpop.eup %1563 }
0x11bd   :  { %v875_v18 = vadd.f32 1.0, %v1564_v17 }
0x11bf   :  { %1565 = vrcp.f32 %v875_v18 }
0x11c9   :  { %v1566_v19 = vpop.eup %1565 }
0x11ca   :  { %v879_v22 = vmul.f32 %v1566_v19, %v786_v4 }
0x122d   :  { %v882_v20 = vpop.permute.xlu0 %881 }
0x122e   :  { %v884_v21 = vmul.f32 %v1566_v19, %v882_v20 }
0x1230   :  { %886 = vrot.lane.b32.xlu1 %v884_v21, %s1711_s3 }
0x12a2   :  { %v887_v23 = vpop.permute.xlu1 %886 }
0x12a3   :  { %v889_v24 = vadd.f32 %v887_v23, %v879_v22 }
0x12a5   :  { %1567 = vtanh.f32 %v889_v24 }
0x12af   :  { %v1568_v25 = vpop.eup %1567 }
0x12b0   :  { %892 = vrot.lane.b32.xlu0 %v1568_v25, %s1710_s16 }
0x1322   :  { %v893_v26 = vpop.permute.xlu0 %892 }
0x1323   :  { %v895_v27 = vmul.f32 %v1566_v19, %v893_v26 }
0x1325   :  { %897 = vrot.lane.b32.xlu1 %v895_v27, %s1711_s3 }
0x1397   :  { %v898_v28 = vpop.permute.xlu1 %897 }
0x1398   :  { %900 = vst.msk [vmem:[#allocation3 + $0x6] sm:$0x1] %vm281_vm2, %v898_v28  ;;  %1417 = vmatmul.mubr.msk.f32.vlgmr.msra.gmra.mrb[8].mxu1 %vm178_vm3, %v898_v28 }
0x1399   :  { %1432 = vmatprep.mubr.msk.f32.mxu1 %vm1708_vm0, %v1709_v1  ;;  %1497 = vmatpush3.bf16.msra.mxu1 %v1496_v48  ;;  %v1255_v1 = vld [vmem:[%s1963_s6] ss:$0 sm:$0xff] }
0x139a   :  { %1498 = vmatprep.subr.bf16.mxu1 %v1707_v0  ;;  %v1253_v0 = vld [vmem:[%s1962_s5] ss:$0 sm:$0xff] }
0x139d   :  { %1500 = vmatpush3.bf16.msra.mxu1 %v1499_v51 }
0x146b   :  { %v970_v30 = vpop.f32.mrb[8].mxu1 }
0x146c   :  { %v974_v31 = vadd.f32 %v970_v30, %v901_v29  ;;  %v1418_v32 = vpop.f32.mrb[9].mxu1 }
0x146e   :  { %1569 = vtanh.f32 %v974_v31  ;;  %v1250_v34 = vmul.f32 -1.442695, %v974_v31 }
0x1470   :  { %1571 = vpow2.f32 %v1250_v34 }
0x1478   :  { %v1570_v33 = vpop.eup %1569 }
0x1479   :  { %984 = vrot.lane.b32.xlu0 %v1570_v33, %s1710_s16 }
0x147a   :  { %v1572_v35 = vpop.eup %1571 }
0x147b   :  { %v978_v36 = vadd.f32 1.0, %v1572_v35 }
0x147d   :  { %1573 = vrcp.f32 %v978_v36 }
0x1487   :  { %v1574_v37 = vpop.eup %1573 }
0x1488   :  { %v982_v40 = vmul.f32 %v1574_v37, %v889_v24 }
0x14eb   :  { %v985_v38 = vpop.permute.xlu0 %984 }
0x14ec   :  { %v987_v39 = vmul.f32 %v1574_v37, %v985_v38 }
0x14ee   :  { %989 = vrot.lane.b32.xlu1 %v987_v39, %s1711_s3 }
0x1560   :  { %v990_v41 = vpop.permute.xlu1 %989 }
0x1561   :  { %v992_v42 = vadd.f32 %v990_v41, %v982_v40 }
0x1563   :  { %1575 = vtanh.f32 %v992_v42 }
0x156d   :  { %v1576_v43 = vpop.eup %1575 }
0x156e   :  { %995 = vrot.lane.b32.xlu0 %v1576_v43, %s1710_s16 }
0x15e0   :  { %v996_v47 = vpop.permute.xlu0 %995 }
0x15e1   :  { %v998_v50 = vmul.f32 %v1574_v37, %v996_v47 }
0x15e3   :  { %1000 = vrot.lane.b32.xlu1 %v998_v50, %s1711_s3 }
0x1655   :  { %v1001_v55 = vpop.permute.xlu1 %1000 }
0x1656   :  { %1003 = vst.msk [vmem:[#allocation3 + $0x7] sm:$0x1] %vm281_vm2, %v1001_v55 }
0x165d   :  { %v1004_v58 = vld [vmem:[#allocation3] sm:$0xff] }
0x165e   :  { %1420 = vmatpush3.msra.mxu0 %v1004_v58 }
0x165f   :  { %1422 = vmatmul.mubr.msk.f32.vlgmr.msra.gmra.mrb[8].mxu0 %vm1013_vm5, %v1251_v57 }
0x1732   :  { %v1083_v59 = vpop.f32.mrb[8].mxu0 }
0x1733   :  { %v1088_v60 = vsel %vm1087_vm6, %v1004_v58, %v1083_v59  ;;  %v1423_v13 = vpop.f32.mrb[9].mxu0 }
0x1734   :  { %1433 = vmatmul.mubr.msk.f32.vlgmr.msra.gmra.mrb[10].mxu1 %vm178_vm3, %v1088_v60 }
0x1807   :  { %v1169_v61 = vpop.f32.mrb[10].mxu1 }
0x1808   :  { %v1170_v62 = vadd.f32 %v1253_v0, %v1169_v61  ;;  %v1434_v63 = vpop.f32.mrb[11].mxu1 }
0x180a   :  { %1577 = vtanh.f32 %v1170_v62 }
0x1814   :  { %v1578_v2 = vpop.eup %1577 }
0x1815   :  { %v1181_v15 = vmul.f32 %v1578_v2, %v1255_v1 }
0x1817   :  { %v1182_v3 = vsel %vm178_vm3, %v1181_v15, 0.0 }
0x1818   :  { %1183 = vadd.xlane.f32.xlu0 %v1182_v3 }
0x18a5   :  { %v1184_v4 = vpop.xlane.xlu0 %1183 }
0x18a6   :  { %v1185_v5 = vrot.slane %v1184_v4, 4 }
0x18a8   :  { %v1186_v6 = vmax.f32 %v1184_v4, %v1185_v5 }
0x18aa   :  { %v1187_v7 = vrot.slane %v1186_v6, 2 }
0x18ac   :  { %v1188_v8 = vmax.f32 %v1186_v6, %v1187_v7 }
0x18ae   :  { %v1189_v9 = vrot.slane %v1188_v8, 1 }
0x18b0   :  { %v1190_v10 = vmax.f32 %v1188_v8, %v1189_v9 }
0x18b2   :  { %v1191_v11 = vsub.f32 %v1184_v4, %v1190_v10 }
0x18b4   :  { %v1192_v12 = vmul.f32 1.442695, %v1191_v11 }
0x18b6   :  { %1579 = vpow2.f32 %v1192_v12 }
0x18c0   :  { %v1580_v14 = vpop.eup %1579 }
0x18c1   :  { %v1194_v16 = vrot.slane %v1580_v14, 4 }
0x18c3   :  { %v1195_v17 = vadd.f32 %v1580_v14, %v1194_v16 }
0x18c5   :  { %v1196_v18 = vrot.slane %v1195_v17, 2 }
0x18c7   :  { %v1197_v19 = vadd.f32 %v1196_v18, %v1195_v17 }
0x18c9   :  { %v1198_v20 = vrot.slane %v1197_v19, 1 }
0x18cb   :  { %v1199_v21 = vadd.f32 %v1198_v20, %v1197_v19 }
0x18cd   :  { %1581 = vrcp.f32 %v1199_v21 }
0x18d7   :  { %v1582_v22 = vpop.eup %1581 }
0x18d8   :  { %v1201_v23 = vmul.f32 %v1582_v22, %v1580_v14 }
0x18da   :  { %1203 = vst.msk [vmem:[%s1965_s8] sm:$0xff] %vm1202_vm7, %v1201_v23  ;;  %v1204_v24 = vmul.f32 %v1201_v23, %v1088_v60 }
0x18dc   :  { %v1205_v25 = vsel %vm178_vm3, %v1204_v24, 0.0 }
0x18dd   :  { %v1206_v26 = vrot.slane %v1205_v25, 4 }
0x18df   :  { %v1207_v27 = vadd.f32 %v1206_v26, %v1205_v25 }
0x18e1   :  { %v1208_v28 = vrot.slane %v1207_v27, 2 }
0x18e3   :  { %v1209_v29 = vadd.f32 %v1208_v28, %v1207_v27 }
0x18e5   :  { %v1210_v30 = vrot.slane %v1209_v29, 1 }
0x18e7   :  { %v1211_v31 = vadd.f32 %v1210_v30, %v1209_v29 }
0x18e9   :  { %1212 = vst.msk [vmem:[#allocation12] sm:$0x1] %vm281_vm2, %v1211_v31 }
0x18ea   :  { %1682 = shalt.err (!%p1679_p8)
}
0x18eb   :  { %s1683_s0 = scalar_lea.hbm %s1964_s7, 16 }
0x18ec   :  { %p1684_p9 = scmp.ne.s32.totalorder %s1964_s7, %s1683_s0  ;;  %p1687_p10 = scmp.lt.u32.totalorder %s1683_s0, %s1964_s7 }
0x18ee   :  { %p1689_p11 = pnand %p1687_p10, %p1684_p9 }
0x18f0   :  { %1692 = shalt.err (!%p1689_p11)
}
0x18f1   :  { %1222 = dma.vmem_to_hbm [thread:$0]  %s1220_s14, 16, %s1964_s7, [#allocation6]  }
0x18f2   :  { %1699 = dma.done.wait [#allocation6], 16  }
0x18f3   :  { %1700 = vsyncadd [#allocation6], 4294967280 }
0x18f4   :  { %1230 = vsyncpa [#allocation5], 1 }
0x18f5   :  { %1231 = vsyncpa [#allocation8], 1 }
0x18f6   :  { %1232 = vsyncpa [#allocation11], 1 }
0x18f7   :  { %1233 = vsyncpa [#allocation6], 1 }

</bundles_post_ra>
